<compile_context>
chip_gen: v6e
topology: v6e:2x2x1
jax: 0.10.0
libtpu: 0.0.40
codegen_flags: <defaults>
</compile_context>

<pallas_src>
import math
from functools import partial
from typing import NamedTuple

import jax
import jax.numpy as jnp
from jax import lax
from jax.experimental import pallas as pl
from jax.experimental.pallas import tpu as pltpu


def _round_up(n, m):
    return ((n + m - 1) // m) * m


def _gelu_exact(x):
    # PyTorch nn.GELU() default = exact erf-based GELU.
    return 0.5 * x * (1.0 + lax.erf(x * 0.7071067811865476))


class NDDims(NamedTuple):
    two_h: int
    hid_s: int
    s_emb: int
    hid_t: int
    t_emb: int
    mlp_hid: int
    out_pad: int
    s_dim: int


# ---------------------------------------------------------------------------
# Kernel
# ---------------------------------------------------------------------------
def neural_drift_kernel(t_ref, x_ref, c_ref, ws1_ref, ws2_ref, wt1_ref, wt2_ref,
                        wm1_ref, wm2_ref, out_ref, *, two_h, hid_s, s_emb,
                        hid_t, t_emb, mlp_hid, out_pad):
    f32 = jnp.float32
    t = t_ref[0, 0]                                                   # SMEM scalar

    # --- TimeEmbedding (single row): one fused sin over [t*pe, t*pe + pi/2] ---
    arg = t * c_ref[0:1, :two_h] + c_ref[1:2, :two_h]                 # (1, 2H)
    feat = jnp.sin(arg)                                               # sin | cos in one EUP pass
    ht = _gelu_exact(jnp.dot(feat, wt1_ref[...], preferred_element_type=f32)
                     + c_ref[4:5, :hid_t])
    temb = _gelu_exact(jnp.dot(ht, wt2_ref[...], preferred_element_type=f32)
                       + c_ref[5:6, :t_emb])                          # (1, t_emb)

    # --- StateEmbedding (batched) ---
    hs = _gelu_exact(jnp.dot(x_ref[...], ws1_ref[...], preferred_element_type=f32)
                     + c_ref[2:3, :hid_s])
    semb = _gelu_exact(jnp.dot(hs, ws2_ref[...], preferred_element_type=f32)
                       + c_ref[3:4, :s_emb])                          # (TB, s_emb)

    # --- Final MLP: cat([semb, temb.expand]) @ Wm1 == semb@Wm1[:S] + temb@Wm1[S:] ---
    # (static ref slices of Wm1: zero-cost views; temb row broadcasts over the batch)
    h = _gelu_exact(jnp.dot(semb, wm1_ref[:s_emb, :], preferred_element_type=f32)
                    + jnp.dot(temb, wm1_ref[s_emb:, :], preferred_element_type=f32)
                    + c_ref[6:7, :mlp_hid])
    out = jnp.dot(h, wm2_ref[...], preferred_element_type=f32) + c_ref[7:8, :out_pad]
    out_ref[...] = out.astype(out_ref.dtype)                          # no GELU after last Linear


# ---------------------------------------------------------------------------
# Host-side parameter setup (done once)
# ---------------------------------------------------------------------------
def init_neural_drift_params(key, s_dim, harmonics_dim=128, t_emb_dim=128,
                             hidden_dim=128, s_emb_dim=128, mlp_hidden_dim=128):
    def linear_init(k, fan_in, fan_out):
        kw, kb = jax.random.split(k)
        bound = 1.0 / math.sqrt(fan_in)
        w = jax.random.uniform(kw, (fan_in, fan_out), jnp.float32, -bound, bound)
        b = jax.random.uniform(kb, (fan_out,), jnp.float32, -bound, bound)
        return w, b

    k1, k2, k3, k4, k5, k6 = jax.random.split(key, 6)
    ws1, bs1 = linear_init(k1, s_dim, hidden_dim)
    ws2, bs2 = linear_init(k2, hidden_dim, s_emb_dim)
    wt1, bt1 = linear_init(k3, 2 * harmonics_dim, hidden_dim)
    wt2, bt2 = linear_init(k4, hidden_dim, t_emb_dim)
    wm1, bm1 = linear_init(k5, s_emb_dim + t_emb_dim, mlp_hidden_dim)
    wm2, bm2 = linear_init(k6, mlp_hidden_dim, s_dim)
    pe = jnp.arange(1, harmonics_dim + 1, dtype=jnp.float32)[None, :] * (2.0 * math.pi)
    return dict(pe=pe, ws1=ws1, bs1=bs1, ws2=ws2, bs2=bs2, wt1=wt1, bt1=bt1,
                wt2=wt2, bt2=bt2, wm1=wm1, bm1=bm1, wm2=wm2, bm2=bm2)


def pack_neural_drift_params(params):
    """One-time host-side packing: lane-pad the output weight/bias, fold cos into a
    sin phase row, and pack all sub-vreg constants into a single (8, W) buffer."""
    pe = params["pe"]
    H = pe.shape[1]
    two_h = 2 * H
    wm2, bm2 = params["wm2"], params["bm2"]
    mlp_hid, s_dim = wm2.shape
    out_pad = _round_up(s_dim, 128)

    wm2_pad = jnp.zeros((mlp_hid, out_pad), jnp.float32).at[:, :s_dim].set(wm2)
    bm2_pad = jnp.zeros((out_pad,), jnp.float32).at[:s_dim].set(bm2)

    width = _round_up(max(two_h, params["bs1"].shape[0], params["bs2"].shape[0],
                          params["bt1"].shape[0], params["bt2"].shape[0],
                          params["bm1"].shape[0], out_pad), 128)

    def row(v):
        return jnp.zeros((width,), jnp.float32).at[:v.shape[0]].set(v.astype(jnp.float32))

    pe_cat = jnp.concatenate([pe[0], pe[0]])                              # sin/cos share pe
    phase = jnp.concatenate([jnp.zeros((H,), jnp.float32),
                             jnp.full((H,), 0.5 * math.pi, jnp.float32)])  # cos(x)=sin(x+pi/2)

    consts = jnp.stack([row(pe_cat), row(phase), row(params["bs1"]), row(params["bs2"]),
                        row(params["bt1"]), row(params["bt2"]), row(params["bm1"]),
                        row(bm2_pad)], axis=0)                             # (8, W): one sublane tile

    dims = NDDims(two_h=two_h, hid_s=params["bs1"].shape[0], s_emb=params["bs2"].shape[0],
                  hid_t=params["bt1"].shape[0], t_emb=params["bt2"].shape[0],
                  mlp_hid=params["bm1"].shape[0], out_pad=out_pad, s_dim=s_dim)
    packed = dict(consts=consts, ws1=params["ws1"], ws2=params["ws2"],
                  wt1=params["wt1"], wt2=params["wt2"], wm1=params["wm1"], wm2=wm2_pad)
    return packed, dims


# ---------------------------------------------------------------------------
# Wrapper
# ---------------------------------------------------------------------------
@partial(jax.jit, static_argnames=("dims",))
def neural_drift_apply(packed, dims, x, t):
    """x: (B, s_dim) f32; t: scalar time. Returns (B, s_dim) (or (B,) if s_dim == 1)."""
    B, s_dim = x.shape
    assert s_dim == dims.s_dim

    TB = min(B, 128)
    Bp = _round_up(B, TB)
    if Bp != B:
        x = jnp.pad(x, ((0, Bp - B), (0, 0)))
    grid = (Bp // TB,)

    t_arr = jnp.asarray(t, jnp.float32).reshape(1, 1)
    consts = packed["consts"]
    ws1, ws2 = packed["ws1"], packed["ws2"]
    wt1, wt2 = packed["wt1"], packed["wt2"]
    wm1, wm2 = packed["wm1"], packed["wm2"]

    kernel = partial(neural_drift_kernel, two_h=dims.two_h, hid_s=dims.hid_s,
                     s_emb=dims.s_emb, hid_t=dims.hid_t, t_emb=dims.t_emb,
                     mlp_hid=dims.mlp_hid, out_pad=dims.out_pad)

    def full(shape):
        return pl.BlockSpec(shape, lambda i: (0, 0))

    flops = (2 * Bp * (s_dim * dims.hid_s + dims.hid_s * dims.s_emb
                       + dims.s_emb * dims.mlp_hid + dims.t_emb * dims.mlp_hid
                       + dims.mlp_hid * dims.out_pad)
             + 2 * (dims.two_h * dims.hid_t + dims.hid_t * dims.t_emb))
    transc = Bp * (dims.hid_s + dims.s_emb + dims.mlp_hid) + dims.two_h + dims.hid_t + dims.t_emb
    bytes_acc = 4 * (x.size + consts.size + ws1.size + ws2.size + wt1.size
                     + wt2.size + wm1.size + wm2.size + 1 + Bp * dims.out_pad)

    out_padded = pl.pallas_call(
        kernel,
        out_shape=jax.ShapeDtypeStruct((Bp, dims.out_pad), jnp.float32),
        grid=grid,
        in_specs=[
            pl.BlockSpec(memory_space=pltpu.MemorySpace.SMEM),      # t scalar
            pl.BlockSpec((TB, s_dim), lambda i: (i, 0)),            # x batch tile
            full(consts.shape),                                     # packed pe/phase/biases
            full(ws1.shape), full(ws2.shape),
            full(wt1.shape), full(wt2.shape),
            full(wm1.shape), full(wm2.shape),
        ],
        out_specs=pl.BlockSpec((TB, dims.out_pad), lambda i: (i, 0)),
        compiler_params=pltpu.CompilerParams(dimension_semantics=("parallel",)),
        cost_estimate=pl.CostEstimate(flops=flops, transcendentals=transc,
                                      bytes_accessed=bytes_acc),
    )(t_arr, x, consts, ws1, ws2, wt1, wt2, wm1, wm2)

    out = out_padded[:B, :s_dim]
    if s_dim == 1:
        out = out[:, 0]       # matches torch .squeeze(-1)
    return out


# ---------------------------------------------------------------------------
# Pure-JAX reference (mirrors the PyTorch module exactly)
# ---------------------------------------------------------------------------
def reference(params, x, t):
    g = _gelu_exact
    arg = t * params["pe"]
    feat = jnp.concatenate([jnp.sin(arg), jnp.cos(arg)], axis=-1)
    ht = g(feat @ params["wt1"] + params["bt1"])
    temb = g(ht @ params["wt2"] + params["bt2"])
    hs = g(x @ params["ws1"] + params["bs1"])
    semb = g(hs @ params["ws2"] + params["bs2"])
    temb_b = jnp.broadcast_to(temb, (x.shape[0], temb.shape[1]))
    comb = jnp.concatenate([semb, temb_b], axis=-1)
    h = g(comb @ params["wm1"] + params["bm1"])
    out = h @ params["wm2"] + params["bm2"]
    if out.shape[-1] == 1:
        out = out[..., 0]
    return out


if __name__ == "__main__":
    # Small but sublane/lane-friendly dims consistent with the module.
    s_dim = 8
    harmonics_dim = 16
    t_emb_dim = 32
    hidden_dim = 32
    s_emb_dim = 32
    mlp_hidden_dim = 32
    B = 16

    key = jax.random.PRNGKey(0)
    kp, kx, kt = jax.random.split(key, 3)
    params = init_neural_drift_params(kp, s_dim, harmonics_dim, t_emb_dim,
                                      hidden_dim, s_emb_dim, mlp_hidden_dim)
    packed, dims = pack_neural_drift_params(params)

    x = jax.random.normal(kx, (B, s_dim), dtype=jnp.float32)
    t = float(jax.random.uniform(kt, (), dtype=jnp.float32))

    out = neural_drift_apply(packed, dims, x, t)
    out = jax.block_until_ready(out)

    ref = reference(params, x, t)
    assert out.shape == ref.shape == (B, s_dim)
    # Slightly loose tolerance: cos(x) is computed as sin(x + pi/2) inside the kernel.
    assert jnp.allclose(out, ref, atol=2e-4, rtol=2e-4), (
        f"mismatch vs reference, max abs diff = {float(jnp.max(jnp.abs(out - ref)))}")

    print("KERNEL_OK")
</pallas_src>

<mosaic_0001>
module attributes {stable_mosaic.version = 11 : i64} {
  func.func @neural_drift_kernel(%arg0: i32, %arg1: memref<1x1xf32, #tpu.memory_space<smem>>, %arg2: memref<16x8xf32, #tpu.memory_space<vmem>>, %arg3: memref<8x128xf32, #tpu.memory_space<vmem>>, %arg4: memref<8x32xf32, #tpu.memory_space<vmem>>, %arg5: memref<32x32xf32, #tpu.memory_space<vmem>>, %arg6: memref<32x32xf32, #tpu.memory_space<vmem>>, %arg7: memref<32x32xf32, #tpu.memory_space<vmem>>, %arg8: memref<64x32xf32, #tpu.memory_space<vmem>>, %arg9: memref<32x128xf32, #tpu.memory_space<vmem>>, %arg10: memref<16x128xf32, #tpu.memory_space<vmem>>) attributes {dimension_semantics = [#tpu.dimension_semantics<parallel>], iteration_bounds = array<i64: 1>, scalar_prefetch = 0 : i64, scratch_operands = 0 : i64, tpu.core_type = #tpu.core_type<tc>, window_params = [{transform_indices = @transform_0, window_bounds = array<i64: 1, 1>}, {transform_indices = @transform_1, window_bounds = array<i64: 16, 8>}, {pipeline_mode = #tpu.pipeline_mode<synchronous>, transform_indices = @transform_2, window_bounds = array<i64: 8, 128>}, {pipeline_mode = #tpu.pipeline_mode<synchronous>, transform_indices = @transform_3, window_bounds = array<i64: 8, 32>}, {pipeline_mode = #tpu.pipeline_mode<synchronous>, transform_indices = @transform_4, window_bounds = array<i64: 32, 32>}, {pipeline_mode = #tpu.pipeline_mode<synchronous>, transform_indices = @transform_5, window_bounds = array<i64: 32, 32>}, {pipeline_mode = #tpu.pipeline_mode<synchronous>, transform_indices = @transform_6, window_bounds = array<i64: 32, 32>}, {pipeline_mode = #tpu.pipeline_mode<synchronous>, transform_indices = @transform_7, window_bounds = array<i64: 64, 32>}, {pipeline_mode = #tpu.pipeline_mode<synchronous>, transform_indices = @transform_8, window_bounds = array<i64: 32, 128>}, {transform_indices = @transform_9, window_bounds = array<i64: 16, 128>}]} {
    %c0 = arith.constant 0 : index
    %c0_0 = arith.constant 0 : index
    %0 = memref.load %arg1[%c0, %c0_0] : memref<1x1xf32, #tpu.memory_space<smem>>
    %c0_1 = arith.constant 0 : index
    %c0_2 = arith.constant 0 : index
    %1 = vector.load %arg3[%c0_1, %c0_2] : memref<8x128xf32, #tpu.memory_space<vmem>>, vector<1x32xf32>
    %2 = vector.broadcast %0 : f32 to vector<1x32xf32>
    %3 = arith.mulf %2, %1 : vector<1x32xf32>
    %c1 = arith.constant 1 : index
    %c0_3 = arith.constant 0 : index
    %4 = vector.load %arg3[%c1, %c0_3] : memref<8x128xf32, #tpu.memory_space<vmem>>, vector<1x32xf32>
    %5 = arith.addf %3, %4 : vector<1x32xf32>
    %6 = math.sin %5 : vector<1x32xf32>
    %c0_4 = arith.constant 0 : index
    %c0_5 = arith.constant 0 : index
    %7 = vector.load %arg6[%c0_4, %c0_5] : memref<32x32xf32, #tpu.memory_space<vmem>>, vector<32x32xf32>
    %cst = arith.constant dense<0.000000e+00> : vector<1x32xf32>
    %8 = tpu.matmul %6, %7, %cst {dimension_numbers = #tpu.dot_dimension_numbers<[1], [0], [0], [1], [0, 0, 1, 1], [], []>} : vector<1x32xf32>, vector<32x32xf32>, vector<1x32xf32> -> vector<1x32xf32>
    %c4 = arith.constant 4 : index
    %c0_6 = arith.constant 0 : index
    %9 = vector.load %arg3[%c4, %c0_6] : memref<8x128xf32, #tpu.memory_space<vmem>>, vector<1x32xf32>
    %10 = arith.addf %8, %9 : vector<1x32xf32>
    %cst_7 = arith.constant 5.000000e-01 : f32
    %11 = vector.broadcast %cst_7 : f32 to vector<1x32xf32>
    %12 = arith.mulf %11, %10 : vector<1x32xf32>
    %cst_8 = arith.constant 0.707106769 : f32
    %13 = vector.broadcast %cst_8 : f32 to vector<1x32xf32>
    %14 = arith.mulf %10, %13 : vector<1x32xf32>
    %15 = math.erf %14 : vector<1x32xf32>
    %cst_9 = arith.constant 1.000000e+00 : f32
    %16 = vector.broadcast %cst_9 : f32 to vector<1x32xf32>
    %17 = arith.addf %16, %15 : vector<1x32xf32>
    %18 = arith.mulf %12, %17 : vector<1x32xf32>
    %c0_10 = arith.constant 0 : index
    %c0_11 = arith.constant 0 : index
    %19 = vector.load %arg7[%c0_10, %c0_11] : memref<32x32xf32, #tpu.memory_space<vmem>>, vector<32x32xf32>
    %cst_12 = arith.constant dense<0.000000e+00> : vector<1x32xf32>
    %20 = tpu.matmul %18, %19, %cst_12 {dimension_numbers = #tpu.dot_dimension_numbers<[1], [0], [0], [1], [0, 0, 1, 1], [], []>} : vector<1x32xf32>, vector<32x32xf32>, vector<1x32xf32> -> vector<1x32xf32>
    %c5 = arith.constant 5 : index
    %c0_13 = arith.constant 0 : index
    %21 = vector.load %arg3[%c5, %c0_13] : memref<8x128xf32, #tpu.memory_space<vmem>>, vector<1x32xf32>
    %22 = arith.addf %20, %21 : vector<1x32xf32>
    %cst_14 = arith.constant 5.000000e-01 : f32
    %23 = vector.broadcast %cst_14 : f32 to vector<1x32xf32>
    %24 = arith.mulf %23, %22 : vector<1x32xf32>
    %cst_15 = arith.constant 0.707106769 : f32
    %25 = vector.broadcast %cst_15 : f32 to vector<1x32xf32>
    %26 = arith.mulf %22, %25 : vector<1x32xf32>
    %27 = math.erf %26 : vector<1x32xf32>
    %cst_16 = arith.constant 1.000000e+00 : f32
    %28 = vector.broadcast %cst_16 : f32 to vector<1x32xf32>
    %29 = arith.addf %28, %27 : vector<1x32xf32>
    %30 = arith.mulf %24, %29 : vector<1x32xf32>
    %c0_17 = arith.constant 0 : index
    %c0_18 = arith.constant 0 : index
    %31 = vector.load %arg2[%c0_17, %c0_18] : memref<16x8xf32, #tpu.memory_space<vmem>>, vector<16x8xf32>
    %c0_19 = arith.constant 0 : index
    %c0_20 = arith.constant 0 : index
    %32 = vector.load %arg4[%c0_19, %c0_20] : memref<8x32xf32, #tpu.memory_space<vmem>>, vector<8x32xf32>
    %cst_21 = arith.constant dense<0.000000e+00> : vector<16x32xf32>
    %33 = tpu.matmul %31, %32, %cst_21 {dimension_numbers = #tpu.dot_dimension_numbers<[1], [0], [0], [1], [0, 0, 1, 1], [], []>} : vector<16x8xf32>, vector<8x32xf32>, vector<16x32xf32> -> vector<16x32xf32>
    %c2 = arith.constant 2 : index
    %c0_22 = arith.constant 0 : index
    %34 = vector.load %arg3[%c2, %c0_22] : memref<8x128xf32, #tpu.memory_space<vmem>>, vector<1x32xf32>
    %35 = vector.broadcast %34 : vector<1x32xf32> to vector<16x32xf32>
    %36 = arith.addf %33, %35 : vector<16x32xf32>
    %cst_23 = arith.constant 5.000000e-01 : f32
    %37 = vector.broadcast %cst_23 : f32 to vector<16x32xf32>
    %38 = arith.mulf %37, %36 : vector<16x32xf32>
    %cst_24 = arith.constant 0.707106769 : f32
    %39 = vector.broadcast %cst_24 : f32 to vector<16x32xf32>
    %40 = arith.mulf %36, %39 : vector<16x32xf32>
    %41 = math.erf %40 : vector<16x32xf32>
    %cst_25 = arith.constant 1.000000e+00 : f32
    %42 = vector.broadcast %cst_25 : f32 to vector<16x32xf32>
    %43 = arith.addf %42, %41 : vector<16x32xf32>
    %44 = arith.mulf %38, %43 : vector<16x32xf32>
    %c0_26 = arith.constant 0 : index
    %c0_27 = arith.constant 0 : index
    %45 = vector.load %arg5[%c0_26, %c0_27] : memref<32x32xf32, #tpu.memory_space<vmem>>, vector<32x32xf32>
    %cst_28 = arith.constant dense<0.000000e+00> : vector<16x32xf32>
    %46 = tpu.matmul %44, %45, %cst_28 {dimension_numbers = #tpu.dot_dimension_numbers<[1], [0], [0], [1], [0, 0, 1, 1], [], []>} : vector<16x32xf32>, vector<32x32xf32>, vector<16x32xf32> -> vector<16x32xf32>
    %c3 = arith.constant 3 : index
    %c0_29 = arith.constant 0 : index
    %47 = vector.load %arg3[%c3, %c0_29] : memref<8x128xf32, #tpu.memory_space<vmem>>, vector<1x32xf32>
    %48 = vector.broadcast %47 : vector<1x32xf32> to vector<16x32xf32>
    %49 = arith.addf %46, %48 : vector<16x32xf32>
    %cst_30 = arith.constant 5.000000e-01 : f32
    %50 = vector.broadcast %cst_30 : f32 to vector<16x32xf32>
    %51 = arith.mulf %50, %49 : vector<16x32xf32>
    %cst_31 = arith.constant 0.707106769 : f32
    %52 = vector.broadcast %cst_31 : f32 to vector<16x32xf32>
    %53 = arith.mulf %49, %52 : vector<16x32xf32>
    %54 = math.erf %53 : vector<16x32xf32>
    %cst_32 = arith.constant 1.000000e+00 : f32
    %55 = vector.broadcast %cst_32 : f32 to vector<16x32xf32>
    %56 = arith.addf %55, %54 : vector<16x32xf32>
    %57 = arith.mulf %51, %56 : vector<16x32xf32>
    %c0_33 = arith.constant 0 : index
    %c0_34 = arith.constant 0 : index
    %58 = vector.load %arg8[%c0_33, %c0_34] : memref<64x32xf32, #tpu.memory_space<vmem>>, vector<32x32xf32>
    %cst_35 = arith.constant dense<0.000000e+00> : vector<16x32xf32>
    %59 = tpu.matmul %57, %58, %cst_35 {dimension_numbers = #tpu.dot_dimension_numbers<[1], [0], [0], [1], [0, 0, 1, 1], [], []>} : vector<16x32xf32>, vector<32x32xf32>, vector<16x32xf32> -> vector<16x32xf32>
    %c32 = arith.constant 32 : index
    %c0_36 = arith.constant 0 : index
    %60 = vector.load %arg8[%c32, %c0_36] : memref<64x32xf32, #tpu.memory_space<vmem>>, vector<32x32xf32>
    %cst_37 = arith.constant dense<0.000000e+00> : vector<1x32xf32>
    %61 = tpu.matmul %30, %60, %cst_37 {dimension_numbers = #tpu.dot_dimension_numbers<[1], [0], [0], [1], [0, 0, 1, 1], [], []>} : vector<1x32xf32>, vector<32x32xf32>, vector<1x32xf32> -> vector<1x32xf32>
    %62 = vector.broadcast %61 : vector<1x32xf32> to vector<16x32xf32>
    %63 = arith.addf %59, %62 : vector<16x32xf32>
    %c6 = arith.constant 6 : index
    %c0_38 = arith.constant 0 : index
    %64 = vector.load %arg3[%c6, %c0_38] : memref<8x128xf32, #tpu.memory_space<vmem>>, vector<1x32xf32>
    %65 = vector.broadcast %64 : vector<1x32xf32> to vector<16x32xf32>
    %66 = arith.addf %63, %65 : vector<16x32xf32>
    %cst_39 = arith.constant 5.000000e-01 : f32
    %67 = vector.broadcast %cst_39 : f32 to vector<16x32xf32>
    %68 = arith.mulf %67, %66 : vector<16x32xf32>
    %cst_40 = arith.constant 0.707106769 : f32
    %69 = vector.broadcast %cst_40 : f32 to vector<16x32xf32>
    %70 = arith.mulf %66, %69 : vector<16x32xf32>
    %71 = math.erf %70 : vector<16x32xf32>
    %cst_41 = arith.constant 1.000000e+00 : f32
    %72 = vector.broadcast %cst_41 : f32 to vector<16x32xf32>
    %73 = arith.addf %72, %71 : vector<16x32xf32>
    %74 = arith.mulf %68, %73 : vector<16x32xf32>
    %c0_42 = arith.constant 0 : index
    %c0_43 = arith.constant 0 : index
    %75 = vector.load %arg9[%c0_42, %c0_43] : memref<32x128xf32, #tpu.memory_space<vmem>>, vector<32x128xf32>
    %cst_44 = arith.constant dense<0.000000e+00> : vector<16x128xf32>
    %76 = tpu.matmul %74, %75, %cst_44 {dimension_numbers = #tpu.dot_dimension_numbers<[1], [0], [0], [1], [0, 0, 1, 1], [], []>} : vector<16x32xf32>, vector<32x128xf32>, vector<16x128xf32> -> vector<16x128xf32>
    %c7 = arith.constant 7 : index
    %c0_45 = arith.constant 0 : index
    %77 = vector.load %arg3[%c7, %c0_45] : memref<8x128xf32, #tpu.memory_space<vmem>>, vector<1x128xf32>
    %78 = vector.broadcast %77 : vector<1x128xf32> to vector<16x128xf32>
    %79 = arith.addf %76, %78 : vector<16x128xf32>
    %c0_46 = arith.constant 0 : index
    %c0_47 = arith.constant 0 : index
    %80 = vector.load %arg10[%c0_46, %c0_47] : memref<16x128xf32, #tpu.memory_space<vmem>>, vector<16x128xf32>
    tpu.vector_store %arg10[%c0_46, %c0_47], %79 {strides = array<i32>} : memref<16x128xf32, #tpu.memory_space<vmem>>, vector<16x128xf32>,
    return
  }
  func.func @transform_0(%arg0: i32) -> (i32, i32) {
    %c0_i32 = arith.constant 0 : i32
    %c0_i32_0 = arith.constant 0 : i32
    %c0_i32_1 = arith.constant 0 : i32
    return %c0_i32, %c0_i32_0 : i32, i32
  }
  func.func @transform_1(%arg0: i32) -> (i32, i32) {
    %c0_i32 = arith.constant 0 : i32
    %c0_i32_0 = arith.constant 0 : i32
    return %arg0, %c0_i32 : i32, i32
  }
  func.func @transform_2(%arg0: i32) -> (i32, i32) {
    %c0_i32 = arith.constant 0 : i32
    %c0_i32_0 = arith.constant 0 : i32
    %c0_i32_1 = arith.constant 0 : i32
    return %c0_i32, %c0_i32_0 : i32, i32
  }
  func.func @transform_3(%arg0: i32) -> (i32, i32) {
    %c0_i32 = arith.constant 0 : i32
    %c0_i32_0 = arith.constant 0 : i32
    %c0_i32_1 = arith.constant 0 : i32
    return %c0_i32, %c0_i32_0 : i32, i32
  }
  func.func @transform_4(%arg0: i32) -> (i32, i32) {
    %c0_i32 = arith.constant 0 : i32
    %c0_i32_0 = arith.constant 0 : i32
    %c0_i32_1 = arith.constant 0 : i32
    return %c0_i32, %c0_i32_0 : i32, i32
  }
  func.func @transform_5(%arg0: i32) -> (i32, i32) {
    %c0_i32 = arith.constant 0 : i32
    %c0_i32_0 = arith.constant 0 : i32
    %c0_i32_1 = arith.constant 0 : i32
    return %c0_i32, %c0_i32_0 : i32, i32
  }
  func.func @transform_6(%arg0: i32) -> (i32, i32) {
    %c0_i32 = arith.constant 0 : i32
    %c0_i32_0 = arith.constant 0 : i32
    %c0_i32_1 = arith.constant 0 : i32
    return %c0_i32, %c0_i32_0 : i32, i32
  }
  func.func @transform_7(%arg0: i32) -> (i32, i32) {
    %c0_i32 = arith.constant 0 : i32
    %c0_i32_0 = arith.constant 0 : i32
    %c0_i32_1 = arith.constant 0 : i32
    return %c0_i32, %c0_i32_0 : i32, i32
  }
  func.func @transform_8(%arg0: i32) -> (i32, i32) {
    %c0_i32 = arith.constant 0 : i32
    %c0_i32_0 = arith.constant 0 : i32
    %c0_i32_1 = arith.constant 0 : i32
    return %c0_i32, %c0_i32_0 : i32, i32
  }
  func.func @transform_9(%arg0: i32) -> (i32, i32) {
    %c0_i32 = arith.constant 0 : i32
    %c0_i32_0 = arith.constant 0 : i32
    return %arg0, %c0_i32 : i32, i32
  }
}

</mosaic_0001>

<bundles_post_ra>
// kernel: neural_drift_apply.1
= control target key start
LH: loop header
LB: loop body
LE: loop exit
PB: predicated region body
PF: predicated region fallthrough
CT: control target
= control target key end

     0   :  { %15 = vsyncpa [#allocation4], 0  ;;  %s987_s30 = smov [#allocation3]   ;;  %s1205_s0 = inlined_call_operand.<no memory space> [shape: f32[1,1], index: 0, kind: input, shape index: {}]   ;;  %s1206_s1 = inlined_call_operand.vmem [shape: f32[16,8], index: 1, kind: input, shape index: {}]   ;;  %s1207_s2 = inlined_call_operand.vmem [shape: f32[8,128], index: 2, kind: input, shape index: {}]   ;;  %s1208_s3 = inlined_call_operand.vmem [shape: f32[8,32], index: 3, kind: input, shape index: {}]   ;;  %s1209_s4 = inlined_call_operand.vmem [shape: f32[32,32], index: 4, kind: input, shape index: {}]   ;;  %s1210_s5 = inlined_call_operand.vmem [shape: f32[32,32], index: 5, kind: input, shape index: {}]   ;;  %s1211_s6 = inlined_call_operand.vmem [shape: f32[32,32], index: 6, kind: input, shape index: {}]   ;;  %s1212_s7 = inlined_call_operand.vmem [shape: f32[64,32], index: 7, kind: input, shape index: {}]   ;;  %s1213_s8 = inlined_call_operand.hbm [shape: f32[32,128], index: 8, kind: input, shape index: {}]   ;;  %s1214_s9 = inlined_call_operand.vmem [shape: f32[16,128], index: 9, kind: output, shape index: {}]  }
   0x1   :  { %s37_s10 = sshll.u32 %s987_s30, 4  ;;  %s38_s10 = int_to_ptr.vmem [resolvable:$true] %s37_s10 }
   0x2   :  { %s973_s11 = scalar_lea.vmem %s38_s10, 512  ;;  %p978_p1 = scmp.lt.s32.totalorder %s38_s10, %s38_s10 }
   0x3   :  { %p974_p0 = scmp.ne.s32.totalorder %s38_s10, %s973_s11  ;;  %p979_p2 = scmp.lt.s32.totalorder %s973_s11, %s973_s11 }
   0x5   :  { %p980_p3 = por %p979_p2, %p978_p1 }
   0x7   :  { %p981_p4 = pnand %p980_p3, %p974_p0 }
   0x9   :  { %984 = shalt.err (!%p981_p4)
}
   0xa   :  { %s988_s12 = smov 128   ;;  %s989_s13 = smov 8  }
   0xb   :  { %43 = dma.hbm_to_vmem [thread:$0]  %s1213_s8, 512, %s38_s10, [#allocation4], %s988_s12, %s988_s12, %s989_s13  }
   0xc   :  { %985 = dma.done.wait [#allocation4], 512  }
   0xd   :  { %986 = vsyncadd [#allocation4], 4294966784  ;;  %v990_v0 = vmov 0.0   ;;  %vm991_vm0 = vmmov 0   ;;  %v49_v1 = vstv %s1205_s0  ;;  %v160_v2 = vld [vmem:[%s1210_s5 + $0x18] sm:$0xff]  ;;  %v159_v3 = vld [vmem:[%s1210_s5 + $0x10] sm:$0xff] }
   0xe   :  { %859 = vmatprep.subr.mxu0 %v990_v0  ;;  %867 = vmatprep.mubr.msk.f32.mxu0 %vm991_vm0, %v990_v0  ;;  %v48_v4 = vld [vmem:[%s1207_s2] sm:$0x1]  ;;  %v158_v5 = vld [vmem:[%s1210_s5 + $0x8] sm:$0xff]  ;;  %v51_v7 = vld [vmem:[%s1207_s2 + $0x1] sm:$0x1]  ;;  %vm162_vm14 = vcmask 261120  }
   0xf   :  { %870 = vmatprep.subr.mxu1 %v990_v0  ;;  %878 = vmatprep.mubr.msk.f32.mxu1 %vm991_vm0, %v990_v0  ;;  %v50_v6 = vmul.f32 %v49_v1, %v48_v4  ;;  %v157_v8 = vld [vmem:[%s1210_s5] sm:$0xff]  ;;  %v992_v22 = vmov 683565275   ;;  %v993_v24 = vmov 2475754826   ;;  %vm332_vm15 = vcmask 64512  }
  0x10   :  { %860 = vmatpush3.msra.mxu0 %v160_v2  ;;  %v1085_v10 = vld [vmem:[%s1208_s3] sm:$0xff]  ;;  %v994_v26 = vmov 2131351028   ;;  %v995_v28 = vmov 2102212464  }
  0x11   :  { %861 = vmatprep.subr.mxu0 %v990_v0  ;;  %v1080_v9 = vadd.f32 %v51_v7, %v50_v6  ;;  %v996_v30 = vmov 920167782   ;;  %v997_v37 = vmov 1326507024  }
  0x12   :  { %862 = vmatpush3.msra.mxu0 %v159_v3 }
  0x13   :  { %863 = vmatprep.subr.mxu0 %v990_v0  ;;  %v56_v11 = vand.u32 2139095040, %v1080_v9  ;;  %v53_v13 = vand.u32 2147483647, %v1080_v9  ;;  %vm55_vm8 = vcmp.lt.s32.totalorder %v1080_v9, 0  ;;  %vm145_vm13 = vweird.f32 %v1080_v9 }
  0x14   :  { %864 = vmatpush3.msra.mxu0 %v158_v5 }
  0x15   :  { %865 = vmatprep.subr.mxu0 %v990_v0  ;;  %v57_v12 = vshrl.u32 %v56_v11, 23  ;;  %v60_v16 = vand.u32 8388607, %v53_v13  ;;  %vm54_vm9 = vcmp.le.f32.partialorder %v53_v13, 0.7853982 }
  0x16   :  { %866 = vmatpush3.msra.mxu0 %v157_v8 }
  0x17   :  { %881 = vmatprep.subr.mxu0 %v1085_v10  ;;  %v804_v14 = vadd.s32 4294967169, %v57_v12  ;;  %v61_v19 = vor.u32 8388608, %v60_v16 }
  0x19   :  { %v63_v15 = vadd.s32 1, %v804_v14  ;;  %v101_v39 = vshll.u32 %v61_v19, 8 }
  0x1b   :  { %vm64_vm1 = vcmp.gt.s32.totalorder %v63_v15, 0 }
  0x1c   :  { %v65_v17 = vsel %vm64_vm1, %v63_v15, 0 }
  0x1d   :  { %v67_v18 = vand.u32 31, %v65_v17  ;;  %v66_v20 = vshrl.u32 %v65_v17, 5 }
  0x1f   :  { %v68_v21 = vsub.s32 32, %v67_v18  ;;  %v70_v23 = vshll.u32 %v992_v22, %v67_v18  ;;  %v73_v25 = vshll.u32 %v993_v24, %v67_v18  ;;  %v76_v27 = vshll.u32 %v994_v26, %v67_v18 }
  0x20   :  { %v79_v29 = vshll.u32 %v995_v28, %v67_v18  ;;  %v82_v31 = vshll.u32 %v996_v30, %v67_v18  ;;  %vm85_vm2 = vcmp.lt.s32.totalorder %v66_v20, 1  ;;  %vm88_vm3 = vcmp.lt.s32.totalorder %v66_v20, 4 }
  0x21   :  { %v69_v32 = vshrl.u32 %v992_v22, %v68_v21  ;;  %v71_v33 = vshrl.u32 %v993_v24, %v68_v21  ;;  %v74_v34 = vshrl.u32 %v994_v26, %v68_v21  ;;  %v77_v35 = vshrl.u32 %v995_v28, %v68_v21 }
  0x22   :  { %v80_v36 = vshrl.u32 %v996_v30, %v68_v21  ;;  %v83_v38 = vshrl.u32 %v997_v37, %v68_v21  ;;  %vm86_vm4 = vcmp.lt.s32.totalorder %v66_v20, 2  ;;  %vm87_vm5 = vcmp.lt.s32.totalorder %v66_v20, 3 }
  0x23   :  { %v72_v40 = vor.u32 %v71_v33, %v70_v23  ;;  %v75_v41 = vor.u32 %v74_v34, %v73_v25  ;;  %v78_v42 = vor.u32 %v77_v35, %v76_v27 }
  0x24   :  { %v81_v43 = vor.u32 %v80_v36, %v79_v29  ;;  %v84_v44 = vor.u32 %v83_v38, %v82_v31 }
  0x25   :  { %v89_v45 = vsel %vm85_vm2, %v69_v32, %v72_v40  ;;  %v90_v46 = vsel %vm88_vm3, %v78_v42, 2102212464  ;;  %v93_v47 = vsel %vm85_vm2, %v72_v40, %v75_v41  ;;  %v97_v48 = vsel %vm85_vm2, %v75_v41, %v78_v42  ;;  %v324_v40 = vld [vmem:[%s1206_s1] sm:$0xff] }
  0x26   :  { %v91_v49 = vsel %vm87_vm5, %v75_v41, %v90_v46  ;;  %v94_v50 = vsel %vm88_vm3, %v81_v43, 920167782  ;;  %v98_v51 = vsel %vm88_vm3, %v84_v44, 1326507024  ;;  %v241_v44 = vld [vmem:[%s1211_s6] sm:$0xff] }
  0x27   :  { %v95_v52 = vsel %vm87_vm5, %v78_v42, %v94_v50  ;;  %v99_v53 = vsel %vm87_vm5, %v81_v43, %v98_v51  ;;  %v92_v54 = vsel %vm86_vm4, %v89_v45, %v91_v49  ;;  %v325_v42 = vld [vmem:[%s1206_s1 + $0x8] sm:$0xff]  ;;  %v427_v45 = vld [vmem:[%s1209_s4 + $0x18] sm:$0xff]  ;;  %v161_v46 = vld [vmem:[%s1207_s2 + $0x4] sm:$0x1] }
  0x28   :  { %v96_v55 = vsel %vm86_vm4, %v93_v47, %v95_v52  ;;  %v100_v56 = vsel %vm86_vm4, %v97_v48, %v99_v53  ;;  %v108_v61 = vmul.u32 %v101_v39, %v92_v54  ;;  %v242_v43 = vld [vmem:[%s1211_s6 + $0x8] sm:$0xff]  ;;  %v810_v50 = vld [vmem:[%s1207_s2 + $0x2] ss:$0 sm:$0xff] }
  0x29   :  { %v1093_v57 = vmul.u32.u64.low %v101_v39, %v100_v56  ;;  %v1094_v58 = vmul.u32.u64.high %v101_v39, %v100_v56, %v1093_v57  ;;  %v1096_v59 = vmul.u32.u64.low %v101_v39, %v96_v55  ;;  %v1097_v60 = vmul.u32.u64.high %v101_v39, %v96_v55, %v1096_v59 }
  0x2b   :  { %vm110_vm6 = vc.u32 %v1094_v58, %v1096_v59  ;;  %v111_v62 = vadd.s32 1, %v1097_v60  ;;  %v109_v12 = vadd.s32 %v1096_v59, %v1094_v58 }
  0x2d   :  { %v112_v63 = vsel %vm110_vm6, %v111_v62, %v1097_v60 }
  0x2e   :  { %v113_v1 = vadd.s32 %v112_v63, %v108_v61  ;;  %v426_v63 = vld [vmem:[%s1209_s4 + $0x10] sm:$0xff] }
  0x30   :  { %v114_v2 = vadd.s32 536870912, %v113_v1 }
  0x32   :  { %v115_v3 = vshrl.u32 %v114_v2, 30  ;;  %v425_v2 = vld [vmem:[%s1209_s4 + $0x8] sm:$0xff] }
  0x34   :  { %v116_v4 = vshll.u32 %v115_v3, 30  ;;  %v139_v26 = vsub.s32 4, %v115_v3 }
  0x36   :  { %v117_v5 = vsub.s32 %v113_v1, %v116_v4  ;;  %v140_v29 = vsel %vm55_vm8, %v139_v26, %v115_v3 }
  0x37   :  { %v142_v31 = vsel %vm54_vm9, 0, %v140_v29 }
  0x38   :  { %v119_v6 = vsub.s32 0, %v117_v5  ;;  %v146_v32 = vadd.s32 3, %v142_v31 }
  0x3a   :  { %v805_v7 = vmin.u32 %v119_v6, %v117_v5  ;;  %v147_v33 = vand.u32 3, %v146_v32  ;;  %v424_v6 = vld [vmem:[%s1209_s4] sm:$0xff] }
  0x3c   :  { %v121_v8 = vclz %v805_v7  ;;  %vm152_vm10 = vcmp.eq.s32.totalorder %v147_v33, 2  ;;  %vm149_vm11 = vcmp.eq.s32.totalorder %v147_v33, 0  ;;  %vm148_vm12 = vcmp.lt.s32.totalorder %v147_v33, 2 }
  0x3e   :  { %v806_v11 = vadd.s32 4294967294, %v121_v8 }
  0x40   :  { %vm807_vm7 = vcmp.lt.s32.totalorder %v806_v11, 0 }
  0x41   :  { %v124_v14 = vsel %vm807_vm7, 0, %v806_v11 }
  0x42   :  { %v125_v15 = vsub.s32 32, %v124_v14  ;;  %v126_v16 = vshll.u32 %v117_v5, %v124_v14  ;;  %v129_v17 = vsub.s32 4294967266, %v124_v14  ;;  %v530_v14 = vld [vmem:[%s1212_s7 + $0x30] sm:$0xff] }
  0x44   :  { %v127_v18 = vshrl.u32 %v109_v12, %v125_v15  ;;  %v130_v19 = vadd.s32 127, %v129_v17  ;;  %v531_v12 = vld [vmem:[%s1212_s7 + $0x38] sm:$0xff]  ;;  %v529_v15 = vld [vmem:[%s1212_s7 + $0x28] sm:$0xff] }
  0x45   :  { %v527_v17 = vld [vmem:[%s1212_s7 + $0x18] sm:$0xff] }
  0x46   :  { %v128_v20 = vor.u32 %v127_v18, %v126_v16  ;;  %v131_v21 = vshll.u32 %v130_v19, 23  ;;  %v528_v16 = vld [vmem:[%s1212_s7 + $0x20] sm:$0xff]  ;;  %v526_v18 = vld [vmem:[%s1212_s7 + $0x10] sm:$0xff] }
  0x47   :  { %v524_v19 = vld [vmem:[%s1212_s7] sm:$0xff] }
  0x48   :  { %v132_v22 = vor.u32 4788187, %v131_v21  ;;  %v135_v23 = vcvt.s32.f32 %v128_v20  ;;  %v245_v20 = vld [vmem:[%s1207_s2 + $0x5] sm:$0x1] }
  0x4a   :  { %v133_v24 = vand.u32 2147483647, %v132_v22 }
  0x4c   :  { %v136_v25 = vmul.f32 %v135_v23, %v133_v24 }
  0x4e   :  { %v137_v27 = vxor.u32 2147483648, %v136_v25 }
  0x50   :  { %v138_v28 = vsel %vm55_vm8, %v137_v27, %v136_v25  ;;  %v813_v25 = vld [vmem:[%s1207_s2 + $0x3] ss:$0 sm:$0xff] }
  0x51   :  { %v141_v30 = vsel %vm54_vm9, %v1080_v9, %v138_v28  ;;  %v244_v9 = vld [vmem:[%s1211_s6 + $0x18] sm:$0xff] }
  0x52   :  { %945 = vcosq.f32 %v141_v30  ;;  %871 = vmatpush3.msra.mxu1 %v244_v9  ;;  %v710_v9 = vld [vmem:[#allocation3 + $0x18] sm:$0xff] }
  0x53   :  { %947 = vsinq.f32 %v141_v30  ;;  %872 = vmatprep.subr.mxu1 %v990_v0 }
  0x5f   :  { %v946_v34 = vpop.eup %945 }
  0x60   :  { %v948_v35 = vpop.eup %947  ;;  %v153_v36 = vxor.u32 2147483648, %v946_v34 }
  0x61   :  { %v150_v37 = vxor.u32 2147483648, %v948_v35 }
  0x62   :  { %v154_v13 = vsel %vm152_vm10, %v153_v36, %v948_v35 }
  0x63   :  { %v151_v38 = vsel %vm149_vm11, %v946_v34, %v150_v37 }
  0x64   :  { %v155_v39 = vsel %vm148_vm12, %v151_v38, %v154_v13 }
  0x65   :  { %v156_v41 = vsel %vm145_vm13, nan, %v155_v39 }
  0x66   :  { %868 = vmatmul.mubr.msk.f32.vlgmr.msra.gmra.mxu0 %vm162_vm14, %v156_v41 }
  0x67   :  { %882 = vmatpush3.msra.mxu0 %v1085_v10  ;;  %883 = vmatprep.mubr.msk.f32.mxu0 %vm332_vm15, %v324_v40  ;;  %v243_v10 = vld [vmem:[%s1211_s6 + $0x10] sm:$0xff] }
  0x68   :  { %897 = vmatprep.subr.mxu0 %v990_v0  ;;  %873 = vmatpush3.msra.mxu1 %v243_v10  ;;  %v709_v10 = vld [vmem:[#allocation3 + $0x10] sm:$0xff] }
  0x69   :  { %874 = vmatprep.subr.mxu1 %v990_v0 }
  0x6a   :  { %884 = vmatmul.mubr.msk.f32.vlgmr.msra.gmra.mxu0 %vm332_vm15, %v325_v42  ;;  %875 = vmatpush3.msra.mxu1 %v242_v43  ;;  %v708_v43 = vld [vmem:[#allocation3 + $0x8] sm:$0xff] }
  0x6b   :  { %905 = vmatprep.mubr.msk.f32.mxu0 %vm991_vm0, %v990_v0  ;;  %876 = vmatprep.subr.mxu1 %v990_v0 }
  0x6c   :  { %877 = vmatpush3.msra.mxu1 %v241_v44  ;;  %898 = vmatpush3.msra.mxu0 %v531_v12  ;;  %v707_v44 = vld [vmem:[#allocation3] sm:$0xff] }
  0x6d   :  { %886 = vmatprep.subr.mxu1 %v427_v45  ;;  %899 = vmatprep.subr.mxu0 %v990_v0 }
  0x6e   :  { %900 = vmatpush3.msra.mxu0 %v530_v14 }
  0x6f   :  { %901 = vmatprep.subr.mxu0 %v990_v0 }
  0x70   :  { %902 = vmatpush3.msra.mxu0 %v529_v15 }
  0x71   :  { %903 = vmatprep.subr.mxu0 %v990_v0  ;;  %v525_v0 = vld [vmem:[%s1212_s7 + $0x8] sm:$0xff] }
  0x72   :  { %904 = vmatpush3.msra.mxu0 %v528_v16 }
  0x73   :  { %919 = vmatprep.subr.mxu0 %v710_v9 }
 0x126   :  { %v232_v47 = vpop.f32.mrf.mxu0 }
 0x127   :  { %v233_v48 = vadd.f32 %v232_v47, %v161_v46 }
 0x128   :  { %v869_v49 = vpop.f32.mrf.mxu0 }
 0x129   :  { %v237_v51 = vmul.f32 0.70710677, %v233_v48  ;;  %v236_v59 = vmul.f32 0.5, %v233_v48 }
 0x12a   :  { %v885_v52 = vpop.f32.mrf.mxu0 }
 0x12b   :  { %949 = verf.f32 %v237_v51  ;;  %v411_v53 = vadd.f32 %v885_v52, %v810_v50  ;;  %v819_v52 = vld [vmem:[%s1207_s2 + $0x6] ss:$0 sm:$0xff] }
 0x12c   :  { %v405_v54 = vpop.f32.mrf.mxu0 }
 0x12d   :  { %v417_v55 = vmul.f32 0.70710677, %v411_v53  ;;  %v406_v56 = vadd.f32 %v810_v50, %v405_v54  ;;  %v415_v7 = vmul.f32 0.5, %v411_v53 }
 0x12f   :  { %951 = verf.f32 %v417_v55  ;;  %v416_v57 = vmul.f32 0.70710677, %v406_v56  ;;  %v414_v4 = vmul.f32 0.5, %v406_v56 }
 0x131   :  { %953 = verf.f32 %v416_v57 }
 0x138   :  { %v950_v58 = vpop.eup %949 }
 0x139   :  { %v239_v60 = vadd.f32 1.0, %v950_v58 }
 0x13b   :  { %v240_v61 = vmul.f32 %v239_v60, %v236_v59 }
 0x13c   :  { %v952_v62 = vpop.eup %951 }
 0x13d   :  { %879 = vmatmul.mubr.msk.f32.vlgmr.msra.gmra.mxu1 %vm162_vm14, %v240_v61  ;;  %v421_v3 = vadd.f32 1.0, %v952_v62 }
 0x13e   :  { %v954_v1 = vpop.eup %953  ;;  %887 = vmatpush3.msra.mxu1 %v427_v45  ;;  %v605_v45 = vlaneseq }
 0x13f   :  { %v420_v5 = vadd.f32 1.0, %v954_v1  ;;  %888 = vmatprep.subr.mxu1 %v426_v63  ;;  %v423_v11 = vmul.f32 %v421_v3, %v415_v7 }
 0x140   :  { %889 = vmatpush3.msra.mxu1 %v426_v63  ;;  %v606_v47 = vshrl.u32 %v605_v45, 7 }
 0x141   :  { %v422_v8 = vmul.f32 %v420_v5, %v414_v4  ;;  %890 = vmatprep.subr.mxu1 %v425_v2  ;;  %v820_v5 = vld [vmem:[%s1207_s2 + $0x7] ss:$0 sm:$0xff] }
 0x142   :  { %891 = vmatpush3.msra.mxu1 %v425_v2  ;;  %v607_v49 = vsub.s32 0, %v606_v47 }
 0x143   :  { %892 = vmatprep.subr.mxu1 %v424_v6  ;;  %894 = vmatprep.mubr.msk.f32.mxu1 %vm162_vm14, %v422_v8 }
 0x144   :  { %893 = vmatpush3.msra.mxu1 %v424_v6 }
 0x145   :  { %895 = vmatmul.mubr.msk.f32.vlgmr.msra.gmra.mxu1 %vm162_vm14, %v423_v11  ;;  %908 = vmatprep.subr.mxu1 %v527_v17 }
 0x146   :  { %909 = vmatpush3.msra.mxu1 %v527_v17 }
 0x147   :  { %910 = vmatprep.subr.mxu1 %v526_v18 }
 0x148   :  { %911 = vmatpush3.msra.mxu1 %v526_v18 }
 0x149   :  { %912 = vmatprep.subr.mxu1 %v525_v0 }
 0x14a   :  { %913 = vmatpush3.msra.mxu1 %v525_v0 }
 0x14b   :  { %914 = vmatprep.subr.mxu1 %v524_v19 }
 0x14c   :  { %915 = vmatpush3.msra.mxu1 %v524_v19 }
 0x1fd   :  { %v315_v21 = vpop.f32.mrf.mxu1 }
 0x1fe   :  { %v316_v22 = vadd.f32 %v315_v21, %v245_v20 }
 0x1ff   :  { %v880_v23 = vpop.f32.mrf.mxu1 }
 0x200   :  { %v320_v24 = vmul.f32 0.70710677, %v316_v22  ;;  %v319_v33 = vmul.f32 0.5, %v316_v22 }
 0x202   :  { %955 = verf.f32 %v320_v24 }
 0x205   :  { %v896_v26 = vpop.f32.mrf.mxu1 }
 0x206   :  { %v511_v27 = vadd.f32 %v896_v26, %v813_v25 }
 0x207   :  { %v505_v28 = vpop.f32.mrf.mxu1 }
 0x208   :  { %v517_v29 = vmul.f32 0.70710677, %v511_v27  ;;  %v506_v30 = vadd.f32 %v813_v25, %v505_v28  ;;  %v515_v40 = vmul.f32 0.5, %v511_v27 }
 0x20a   :  { %957 = verf.f32 %v517_v29  ;;  %v516_v31 = vmul.f32 0.70710677, %v506_v30  ;;  %v514_v38 = vmul.f32 0.5, %v506_v30 }
 0x20c   :  { %959 = verf.f32 %v516_v31 }
 0x20f   :  { %v956_v32 = vpop.eup %955 }
 0x210   :  { %v322_v34 = vadd.f32 1.0, %v956_v32 }
 0x212   :  { %v323_v35 = vmul.f32 %v322_v34, %v319_v33 }
 0x214   :  { %906 = vmatmul.mubr.msk.f32.vlgmr.msra.gmra.mxu0 %vm162_vm14, %v323_v35 }
 0x215   :  { %920 = vmatpush3.msra.mxu0 %v710_v9 }
 0x216   :  { %921 = vmatprep.subr.mxu0 %v709_v10 }
 0x217   :  { %v958_v36 = vpop.eup %957  ;;  %922 = vmatpush3.msra.mxu0 %v709_v10 }
 0x218   :  { %v521_v13 = vadd.f32 1.0, %v958_v36  ;;  %923 = vmatprep.subr.mxu0 %v708_v43 }
 0x219   :  { %v960_v37 = vpop.eup %959  ;;  %924 = vmatpush3.msra.mxu0 %v708_v43 }
 0x21a   :  { %v520_v39 = vadd.f32 1.0, %v960_v37  ;;  %v523_v42 = vmul.f32 %v521_v13, %v515_v40  ;;  %925 = vmatprep.subr.mxu0 %v707_v44 }
 0x21b   :  { %926 = vmatpush3.msra.mxu0 %v707_v44 }
 0x21c   :  { %v522_v41 = vmul.f32 %v520_v39, %v514_v38 }
 0x21e   :  { %916 = vmatprep.mubr.msk.f32.mxu1 %vm162_vm14, %v522_v41 }
 0x21f   :  { %917 = vmatmul.mubr.msk.f32.vlgmr.msra.gmra.mxu1 %vm162_vm14, %v523_v42 }
 0x2d4   :  { %v601_v46 = vpop.f32.mrf.mxu0 }
 0x2d5   :  { %v608_v50 = vrot.slane %v601_v46, %v607_v49 }
 0x2d6   :  { %v907_v48 = vpop.f32.mrf.mxu0 }
 0x2df   :  { %v918_v51 = vpop.f32.mrf.mxu1 }
 0x2e0   :  { %v687_v53 = vadd.f32 %v918_v51, %v608_v50 }
 0x2e1   :  { %v681_v54 = vpop.f32.mrf.mxu1 }
 0x2e2   :  { %v696_v55 = vadd.f32 %v819_v52, %v687_v53  ;;  %v682_v56 = vadd.f32 %v681_v54, %v608_v50 }
 0x2e4   :  { %v700_v57 = vmul.f32 0.70710677, %v696_v55  ;;  %v695_v58 = vadd.f32 %v819_v52, %v682_v56  ;;  %v698_v2 = vmul.f32 0.5, %v696_v55 }
 0x2e6   :  { %961 = verf.f32 %v700_v57  ;;  %v699_v59 = vmul.f32 0.70710677, %v695_v58  ;;  %v697_v63 = vmul.f32 0.5, %v695_v58 }
 0x2e8   :  { %963 = verf.f32 %v699_v59 }
 0x2f3   :  { %v962_v60 = vpop.eup %961 }
 0x2f4   :  { %v704_v62 = vadd.f32 1.0, %v962_v60 }
 0x2f5   :  { %v964_v61 = vpop.eup %963 }
 0x2f6   :  { %v703_v1 = vadd.f32 1.0, %v964_v61  ;;  %v706_v4 = vmul.f32 %v704_v62, %v698_v2 }
 0x2f8   :  { %v705_v3 = vmul.f32 %v703_v1, %v697_v63 }
 0x2fa   :  { %927 = vmatprep.mubr.msk.f32.mxu0 %vm162_vm14, %v705_v3 }
 0x2fb   :  { %928 = vmatmul.mubr.msk.f32.vlgmr.msra.gmra.mxu0 %vm162_vm14, %v706_v4 }
 0x3bb   :  { %v929_v6 = vpop.f32.mrf.mxu0 }
 0x3bc   :  { %v794_v7 = vadd.f32 %v929_v6, %v820_v5 }
 0x3bd   :  { %v788_v8 = vpop.f32.mrf.mxu0 }
 0x3be   :  { %798 = vst [vmem:[%s1214_s9 + $0x8] sm:$0xff] %v794_v7  ;;  %v789_v11 = vadd.f32 %v820_v5, %v788_v8 }
 0x3c0   :  { %797 = vst [vmem:[%s1214_s9] sm:$0xff] %v789_v11 }
 0x3c1   :  { %803 = vsyncpa [#allocation4], 1 }

</bundles_post_ra>
